<compile_context>
chip_gen: v6e
topology: v6e:2x2x1
jax: 0.10.0
libtpu: 0.0.40
codegen_flags: <defaults>
</compile_context>

<pallas_src>
import functools

import jax
import jax.numpy as jnp
from jax.experimental import pallas as pl
from jax.experimental.pallas import tpu as pltpu


def _round_up(x, m):
    return ((x + m - 1) // m) * m


# --------------------------------------------------------------------------
# Kernel A: hidden stack (fc1 -> ReLU -> fc2 -> ReLU -> LN(h1+h2) ->
#                         fc3 -> ReLU -> LN(h2+h3)), one batch tile per step.
# --------------------------------------------------------------------------
def _hidden_stack_kernel(
    x_ref,                       # (TB, C*E) bf16 flattened embeddings
    w1_ref, b1_ref,              # (C*E, H) bf16, (1, H) f32
    w2_ref, b2_ref,              # (H, H)   bf16, (1, H) f32
    w3_ref, b3_ref,              # (H, H)   bf16, (1, H) f32
    ln1_g_ref, ln1_b_ref,        # (1, H) f32
    ln2_g_ref, ln2_b_ref,        # (1, H) f32
    h3_ref,                      # (TB, H) bf16 output
):
    eps = 1e-5  # nn.LayerNorm default

    def layer_norm(h, g, b):
        mu = jnp.mean(h, axis=-1, keepdims=True)
        d = h - mu
        var = jnp.mean(d * d, axis=-1, keepdims=True)
        return d * jax.lax.rsqrt(var + eps) * g + b

    x = x_ref[...]

    # fc1 + ReLU
    h1 = jnp.dot(x, w1_ref[...], preferred_element_type=jnp.float32) + b1_ref[...]
    h1 = jnp.maximum(h1, 0.0)

    # fc2 + ReLU   (dropout == identity in eval mode)
    h2 = jnp.dot(h1.astype(jnp.bfloat16), w2_ref[...],
                 preferred_element_type=jnp.float32) + b2_ref[...]
    h2 = jnp.maximum(h2, 0.0)

    # add_norm1: LayerNorm(hidden + hidden2)
    h2 = layer_norm(h1 + h2, ln1_g_ref[...], ln1_b_ref[...])

    # fc3 + ReLU   (dropout == identity in eval mode)
    h3 = jnp.dot(h2.astype(jnp.bfloat16), w3_ref[...],
                 preferred_element_type=jnp.float32) + b3_ref[...]
    h3 = jnp.maximum(h3, 0.0)

    # add_norm2: LayerNorm(hidden2 + hidden3)
    h3 = layer_norm(h2 + h3, ln2_g_ref[...], ln2_b_ref[...])

    h3_ref[...] = h3.astype(h3_ref.dtype)


# --------------------------------------------------------------------------
# Kernel B: fc4 (the dominant matmul), tiled (vocab-outer x batch-inner).
# --------------------------------------------------------------------------
def _fc4_kernel(h3_ref, w4_ref, b4_ref, out_ref):
    logits = jnp.dot(h3_ref[...], w4_ref[...],
                     preferred_element_type=jnp.float32) + b4_ref[...]
    out_ref[...] = logits.astype(out_ref.dtype)


# --------------------------------------------------------------------------
# One-time parameter prep (run OUTSIDE the jitted forward): bf16 casts,
# fc4 padding to the vocab tile, bf16 embedding table.
# --------------------------------------------------------------------------
def prepare_params(params, *, tv=2048):
    V = params["w4"].shape[1]
    tv = min(tv, _round_up(V, 128))
    Vp = _round_up(V, tv)

    w4 = params["w4"].astype(jnp.bfloat16)
    b4 = params["b4"].astype(jnp.float32)
    if Vp != V:
        w4 = jnp.pad(w4, ((0, 0), (0, Vp - V)))
        b4 = jnp.pad(b4, ((0, 0), (0, Vp - V)))

    prep = dict(
        embedding=params["embedding"].astype(jnp.bfloat16),
        w1=params["w1"].astype(jnp.bfloat16), b1=params["b1"].astype(jnp.float32),
        w2=params["w2"].astype(jnp.bfloat16), b2=params["b2"].astype(jnp.float32),
        w3=params["w3"].astype(jnp.bfloat16), b3=params["b3"].astype(jnp.float32),
        ln1_gamma=params["ln1_gamma"].astype(jnp.float32),
        ln1_beta=params["ln1_beta"].astype(jnp.float32),
        ln2_gamma=params["ln2_gamma"].astype(jnp.float32),
        ln2_beta=params["ln2_beta"].astype(jnp.float32),
        w4=w4, b4=b4,
    )
    return jax.tree_util.tree_map(jax.device_put, prep)


# --------------------------------------------------------------------------
# Forward pass.
# --------------------------------------------------------------------------
@functools.partial(jax.jit, static_argnames=("vocab_size", "tb", "tv", "out_dtype"))
def neural_lm3_forward(x_ids, prep, *, vocab_size, tb=None, tv=2048,
                       out_dtype=jnp.float32):
    """x_ids: (B, context) int32 token indices. Returns (B, vocab) logits."""
    B, C = x_ids.shape
    emb = prep["embedding"]
    E = emb.shape[1]
    H = prep["w1"].shape[1]
    Vp = prep["w4"].shape[1]
    CE = C * E
    V = vocab_size

    tv = min(tv, Vp)
    assert Vp % tv == 0, "prepare_params(tv=...) must match neural_lm3_forward tv"

    # glue: frozen-embedding gather + flatten == self.embedding(x).view(B, -1)
    # TODO(synk): fuse the gather into kernel A (scalar-prefetch / manual DMA
    # row gather) to remove this HBM round trip for large-batch serving.
    embeds = jnp.take(emb, x_ids, axis=0).reshape(B, CE)   # bf16

    # --- batch tiling (multiple of 8 sublanes; pad + slice) ---
    if tb is None:
        tb = min(256, _round_up(B, 8))
    Bp = _round_up(B, tb)
    if Bp != B:
        embeds = jnp.pad(embeds, ((0, Bp - B), (0, 0)))

    nb = Bp // tb
    nv = Vp // tv

    def resident(shape):  # full block, constant index_map -> stays in VMEM
        return pl.BlockSpec(shape, lambda i: (0, 0))

    # ---------------- kernel A: hidden stack ----------------
    h3 = pl.pallas_call(
        _hidden_stack_kernel,
        out_shape=jax.ShapeDtypeStruct((Bp, H), jnp.bfloat16),
        grid=(nb,),
        in_specs=[
            pl.BlockSpec((tb, CE), lambda i: (i, 0)),   # embeds (pipelined over i)
            resident((CE, H)), resident((1, H)),        # w1, b1
            resident((H, H)),  resident((1, H)),        # w2, b2
            resident((H, H)),  resident((1, H)),        # w3, b3
            resident((1, H)),  resident((1, H)),        # ln1 gamma, beta
            resident((1, H)),  resident((1, H)),        # ln2 gamma, beta
        ],
        out_specs=pl.BlockSpec((tb, H), lambda i: (i, 0)),
        compiler_params=pltpu.CompilerParams(
            dimension_semantics=("parallel",),
        ),
        cost_estimate=pl.CostEstimate(
            flops=2 * Bp * (CE * H + 2 * H * H),
            transcendentals=2 * Bp,
            bytes_accessed=int(Bp * CE * 2 + (CE * H + 2 * H * H) * 2 + Bp * H * 2),
        ),
    )(
        embeds,
        prep["w1"], prep["b1"], prep["w2"], prep["b2"], prep["w3"], prep["b3"],
        prep["ln1_gamma"], prep["ln1_beta"], prep["ln2_gamma"], prep["ln2_beta"],
    )

    # ---------------- kernel B: fc4 ----------------
    out_bytes = jnp.dtype(out_dtype).itemsize
    # Double-buffered per-step VMEM: h3 tile + w4 tile + b4 tile + out tile.
    needed = 2 * (tb * H * 2 + H * tv * 2 + tv * 4 + tb * tv * out_bytes)
    vmem_limit = max(16 << 20, int(needed * 1.5) + (4 << 20))   # derived, with headroom

    logits = pl.pallas_call(
        _fc4_kernel,
        out_shape=jax.ShapeDtypeStruct((Bp, Vp), out_dtype),
        # vocab is the OUTER axis: each w4/b4 tile is DMA'd once total (its block
        # index is constant over the inner batch loop); h3 tiles are tiny.
        # Both axes are independent -> both "parallel" (megacore shards vocab
        # across v7x's two TensorCores even when Bp == tb).
        grid=(nv, nb),
        in_specs=[
            pl.BlockSpec((tb, H), lambda j, i: (i, 0)),   # h3 (bf16)
            pl.BlockSpec((H, tv), lambda j, i: (0, j)),   # w4 vocab tile
            pl.BlockSpec((1, tv), lambda j, i: (0, j)),   # b4 vocab tile
        ],
        out_specs=pl.BlockSpec((tb, tv), lambda j, i: (i, j)),
        compiler_params=pltpu.CompilerParams(
            dimension_semantics=("parallel", "parallel"),
            vmem_limit_bytes=vmem_limit,
        ),
        cost_estimate=pl.CostEstimate(
            flops=2 * Bp * H * Vp,
            transcendentals=0,
            bytes_accessed=int(H * Vp * 2 + Vp * 4 + nv * Bp * H * 2
                               + Bp * Vp * out_bytes),
        ),
    )(h3, prep["w4"], prep["b4"])

    return logits[:B, :V]


# --------------------------------------------------------------------------
# Pure-JAX f32 reference (eval mode) for correctness checking.
# --------------------------------------------------------------------------
def neural_lm3_reference(x_ids, params):
    eps = 1e-5
    B, C = x_ids.shape
    emb = params["embedding"]
    x = jnp.take(emb, x_ids, axis=0).reshape(B, -1)

    def ln(h, g, b):
        mu = jnp.mean(h, axis=-1, keepdims=True)
        var = jnp.mean((h - mu) ** 2, axis=-1, keepdims=True)
        return (h - mu) * jax.lax.rsqrt(var + eps) * g + b

    h1 = jax.nn.relu(x @ params["w1"] + params["b1"])
    h2 = jax.nn.relu(h1 @ params["w2"] + params["b2"])
    h2 = ln(h1 + h2, params["ln1_gamma"], params["ln1_beta"])
    h3 = jax.nn.relu(h2 @ params["w3"] + params["b3"])
    h3 = ln(h2 + h3, params["ln2_gamma"], params["ln2_beta"])
    return h3 @ params["w4"] + params["b4"]


def make_params(key, vocab_size, embedding_dim, hidden_dim, context_size):
    """Synthetic f32 parameters mirroring NeuralLM3.__init__ shapes.

    PyTorch nn.Linear stores weight as (out, in); we store the transpose
    (in, out) so the kernel computes x @ W + b.  Biases / LN params are kept
    as (1, features) 2-D lane-major slabs.
    """
    ks = jax.random.split(key, 10)
    H = hidden_dim
    in1 = embedding_dim * context_size

    def lin(k, fan_in, fan_out):
        kw, kb = jax.random.split(k)
        bound = 1.0 / jnp.sqrt(fan_in)
        w = jax.random.uniform(kw, (fan_in, fan_out), jnp.float32, -bound, bound)
        b = jax.random.uniform(kb, (1, fan_out), jnp.float32, -bound, bound)
        return w, b

    w1, b1 = lin(ks[0], in1, H)
    w2, b2 = lin(ks[1], H, H)
    w3, b3 = lin(ks[2], H, H)
    w4, b4 = lin(ks[3], H, vocab_size)

    return dict(
        embedding=jax.random.normal(ks[4], (vocab_size, embedding_dim), jnp.float32),
        w1=w1, b1=b1, w2=w2, b2=b2, w3=w3, b3=b3, w4=w4, b4=b4,
        # LayerNorm affine params (perturbed so the affine path is exercised).
        ln1_gamma=1.0 + 0.1 * jax.random.normal(ks[5], (1, H), jnp.float32),
        ln1_beta=0.1 * jax.random.normal(ks[6], (1, H), jnp.float32),
        ln2_gamma=1.0 + 0.1 * jax.random.normal(ks[7], (1, H), jnp.float32),
        ln2_beta=0.1 * jax.random.normal(ks[8], (1, H), jnp.float32),
    )


if __name__ == "__main__":
    # Small shapes consistent with the spec (hidden_dim=128, context_size=3).
    vocab_size = 512        # with tv=256 below -> 2 vocab tiles, exercises tiling
    embedding_dim = 32
    hidden_dim = 128
    context_size = 3
    batch = 10              # not a multiple of 8 -> exercises batch padding

    key = jax.random.PRNGKey(0)
    k_params, k_ids = jax.random.split(key)
    params = make_params(k_params, vocab_size, embedding_dim, hidden_dim, context_size)
    x_ids = jax.random.randint(k_ids, (batch, context_size), 0, vocab_size,
                               dtype=jnp.int32)

    # Demo uses tv=256 so the tiny vocab is split into 2 tiles; production
    # default is tv=2048 (prepare_params and forward must use the same tv).
    tv = 256
    prep = prepare_params(params, tv=tv)

    logits = neural_lm3_forward(x_ids, prep, vocab_size=vocab_size, tv=tv)
    jax.block_until_ready(logits)

    assert logits.shape == (batch, vocab_size)
    assert bool(jnp.all(jnp.isfinite(logits)))

    # Correctness vs. pure-JAX f32 reference (tolerance scales with logit
    # magnitude: weights/activations feed the MXU in bf16).
    ref = neural_lm3_reference(x_ids, params)
    max_err = float(jnp.max(jnp.abs(logits - ref)))
    scale = float(jnp.max(jnp.abs(ref)))
    tol = 0.02 * max(1.0, scale) + 0.02
    assert max_err < tol, f"max abs error vs reference too large: {max_err} (tol={tol})"

    print("KERNEL_OK")
</pallas_src>

<mosaic_0001>
module attributes {stable_mosaic.version = 11 : i64} {
  func.func @_fc4_kernel(%arg0: i32, %arg1: i32, %arg2: memref<16x128xbf16, #tpu.memory_space<vmem>>, %arg3: memref<128x256xbf16, #tpu.memory_space<vmem>>, %arg4: memref<1x256xf32, #tpu.memory_space<vmem>>, %arg5: memref<16x256xf32, #tpu.memory_space<vmem>>) attributes {dimension_semantics = [#tpu.dimension_semantics<parallel>, #tpu.dimension_semantics<parallel>], iteration_bounds = array<i64: 2, 1>, scalar_prefetch = 0 : i64, scratch_operands = 0 : i64, tpu.core_type = #tpu.core_type<tc>, window_params = [{transform_indices = @transform_0, window_bounds = array<i64: 16, 128>}, {transform_indices = @transform_1, window_bounds = array<i64: 128, 256>}, {transform_indices = @transform_2, window_bounds = array<i64: 1, 256>}, {transform_indices = @transform_3, window_bounds = array<i64: 16, 256>}]} {
    %c0 = arith.constant 0 : index
    %c0_0 = arith.constant 0 : index
    %0 = vector.load %arg2[%c0, %c0_0] : memref<16x128xbf16, #tpu.memory_space<vmem>>, vector<16x128xbf16>
    %c0_1 = arith.constant 0 : index
    %c0_2 = arith.constant 0 : index
    %1 = vector.load %arg3[%c0_1, %c0_2] : memref<128x256xbf16, #tpu.memory_space<vmem>>, vector<128x256xbf16>
    %cst = arith.constant dense<0.000000e+00> : vector<16x256xf32>
    %2 = tpu.matmul %0, %1, %cst {dimension_numbers = #tpu.dot_dimension_numbers<[1], [0], [0], [1], [0, 0, 1, 1], [], []>} : vector<16x128xbf16>, vector<128x256xbf16>, vector<16x256xf32> -> vector<16x256xf32>
    %c0_3 = arith.constant 0 : index
    %c0_4 = arith.constant 0 : index
    %3 = vector.load %arg4[%c0_3, %c0_4] : memref<1x256xf32, #tpu.memory_space<vmem>>, vector<1x256xf32>
    %4 = vector.broadcast %3 : vector<1x256xf32> to vector<16x256xf32>
    %5 = arith.addf %2, %4 : vector<16x256xf32>
    %c0_5 = arith.constant 0 : index
    %c0_6 = arith.constant 0 : index
    %6 = vector.load %arg5[%c0_5, %c0_6] : memref<16x256xf32, #tpu.memory_space<vmem>>, vector<16x256xf32>
    tpu.vector_store %arg5[%c0_5, %c0_6], %5 {strides = array<i32>} : memref<16x256xf32, #tpu.memory_space<vmem>>, vector<16x256xf32>,
    return
  }
  func.func @transform_0(%arg0: i32, %arg1: i32) -> (i32, i32) {
    %c0_i32 = arith.constant 0 : i32
    %c0_i32_0 = arith.constant 0 : i32
    return %arg1, %c0_i32 : i32, i32
  }
  func.func @transform_1(%arg0: i32, %arg1: i32) -> (i32, i32) {
    %c0_i32 = arith.constant 0 : i32
    %c0_i32_0 = arith.constant 0 : i32
    return %c0_i32, %arg0 : i32, i32
  }
  func.func @transform_2(%arg0: i32, %arg1: i32) -> (i32, i32) {
    %c0_i32 = arith.constant 0 : i32
    %c0_i32_0 = arith.constant 0 : i32
    return %c0_i32, %arg0 : i32, i32
  }
  func.func @transform_3(%arg0: i32, %arg1: i32) -> (i32, i32) {
    %c0_i32 = arith.constant 0 : i32
    return %arg1, %arg0 : i32, i32
  }
}

module attributes {stable_mosaic.version = 11 : i64} {
  func.func @_hidden_stack_kernel(%arg0: i32, %arg1: memref<16x96xbf16, #tpu.memory_space<vmem>>, %arg2: memref<96x128xbf16, #tpu.memory_space<vmem>>, %arg3: memref<1x128xf32, #tpu.memory_space<vmem>>, %arg4: memref<128x128xbf16, #tpu.memory_space<vmem>>, %arg5: memref<1x128xf32, #tpu.memory_space<vmem>>, %arg6: memref<128x128xbf16, #tpu.memory_space<vmem>>, %arg7: memref<1x128xf32, #tpu.memory_space<vmem>>, %arg8: memref<1x128xf32, #tpu.memory_space<vmem>>, %arg9: memref<1x128xf32, #tpu.memory_space<vmem>>, %arg10: memref<1x128xf32, #tpu.memory_space<vmem>>, %arg11: memref<1x128xf32, #tpu.memory_space<vmem>>, %arg12: memref<16x128xbf16, #tpu.memory_space<vmem>>) attributes {dimension_semantics = [#tpu.dimension_semantics<parallel>], iteration_bounds = array<i64: 1>, scalar_prefetch = 0 : i64, scratch_operands = 0 : i64, tpu.core_type = #tpu.core_type<tc>, window_params = [{transform_indices = @transform_0, window_bounds = array<i64: 16, 96>}, {pipeline_mode = #tpu.pipeline_mode<synchronous>, transform_indices = @transform_1, window_bounds = array<i64: 96, 128>}, {pipeline_mode = #tpu.pipeline_mode<synchronous>, transform_indices = @transform_2, window_bounds = array<i64: 1, 128>}, {pipeline_mode = #tpu.pipeline_mode<synchronous>, transform_indices = @transform_3, window_bounds = array<i64: 128, 128>}, {pipeline_mode = #tpu.pipeline_mode<synchronous>, transform_indices = @transform_4, window_bounds = array<i64: 1, 128>}, {pipeline_mode = #tpu.pipeline_mode<synchronous>, transform_indices = @transform_5, window_bounds = array<i64: 128, 128>}, {pipeline_mode = #tpu.pipeline_mode<synchronous>, transform_indices = @transform_6, window_bounds = array<i64: 1, 128>}, {pipeline_mode = #tpu.pipeline_mode<synchronous>, transform_indices = @transform_7, window_bounds = array<i64: 1, 128>}, {pipeline_mode = #tpu.pipeline_mode<synchronous>, transform_indices = @transform_8, window_bounds = array<i64: 1, 128>}, {pipeline_mode = #tpu.pipeline_mode<synchronous>, transform_indices = @transform_9, window_bounds = array<i64: 1, 128>}, {pipeline_mode = #tpu.pipeline_mode<synchronous>, transform_indices = @transform_10, window_bounds = array<i64: 1, 128>}, {transform_indices = @transform_11, window_bounds = array<i64: 16, 128>}]} {
    %c0 = arith.constant 0 : index
    %c0_0 = arith.constant 0 : index
    %0 = vector.load %arg1[%c0, %c0_0] : memref<16x96xbf16, #tpu.memory_space<vmem>>, vector<16x96xbf16>
    %c0_1 = arith.constant 0 : index
    %c0_2 = arith.constant 0 : index
    %1 = vector.load %arg2[%c0_1, %c0_2] : memref<96x128xbf16, #tpu.memory_space<vmem>>, vector<96x128xbf16>
    %cst = arith.constant dense<0.000000e+00> : vector<16x128xf32>
    %2 = tpu.matmul %0, %1, %cst {dimension_numbers = #tpu.dot_dimension_numbers<[1], [0], [0], [1], [0, 0, 1, 1], [], []>} : vector<16x96xbf16>, vector<96x128xbf16>, vector<16x128xf32> -> vector<16x128xf32>
    %c0_3 = arith.constant 0 : index
    %c0_4 = arith.constant 0 : index
    %3 = vector.load %arg3[%c0_3, %c0_4] : memref<1x128xf32, #tpu.memory_space<vmem>>, vector<1x128xf32>
    %4 = vector.broadcast %3 : vector<1x128xf32> to vector<16x128xf32>
    %5 = arith.addf %2, %4 : vector<16x128xf32>
    %cst_5 = arith.constant 0.000000e+00 : f32
    %6 = vector.broadcast %cst_5 : f32 to vector<16x128xf32>
    %7 = arith.maximumf %5, %6 : vector<16x128xf32>
    %8 = arith.truncf %7 : vector<16x128xf32> to vector<16x128xbf16>
    %c0_6 = arith.constant 0 : index
    %c0_7 = arith.constant 0 : index
    %9 = vector.load %arg4[%c0_6, %c0_7] : memref<128x128xbf16, #tpu.memory_space<vmem>>, vector<128x128xbf16>
    %cst_8 = arith.constant dense<0.000000e+00> : vector<16x128xf32>
    %10 = tpu.matmul %8, %9, %cst_8 {dimension_numbers = #tpu.dot_dimension_numbers<[1], [0], [0], [1], [0, 0, 1, 1], [], []>} : vector<16x128xbf16>, vector<128x128xbf16>, vector<16x128xf32> -> vector<16x128xf32>
    %c0_9 = arith.constant 0 : index
    %c0_10 = arith.constant 0 : index
    %11 = vector.load %arg5[%c0_9, %c0_10] : memref<1x128xf32, #tpu.memory_space<vmem>>, vector<1x128xf32>
    %12 = vector.broadcast %11 : vector<1x128xf32> to vector<16x128xf32>
    %13 = arith.addf %10, %12 : vector<16x128xf32>
    %cst_11 = arith.constant 0.000000e+00 : f32
    %14 = vector.broadcast %cst_11 : f32 to vector<16x128xf32>
    %15 = arith.maximumf %13, %14 : vector<16x128xf32>
    %16 = arith.addf %7, %15 : vector<16x128xf32>
    %c0_12 = arith.constant 0 : index
    %c0_13 = arith.constant 0 : index
    %17 = vector.load %arg8[%c0_12, %c0_13] : memref<1x128xf32, #tpu.memory_space<vmem>>, vector<1x128xf32>
    %c0_14 = arith.constant 0 : index
    %c0_15 = arith.constant 0 : index
    %18 = vector.load %arg9[%c0_14, %c0_15] : memref<1x128xf32, #tpu.memory_space<vmem>>, vector<1x128xf32>
    %cst_16 = arith.constant dense<0.000000e+00> : vector<16xf32>
    %19 = vector.multi_reduction <add>, %16, %cst_16 [1] : vector<16x128xf32> to vector<16xf32>
    %20 = vector.shape_cast %19 : vector<16xf32> to vector<16x1xf32>
    %cst_17 = arith.constant 1.280000e+02 : f32
    %21 = vector.broadcast %cst_17 : f32 to vector<16x1xf32>
    %22 = arith.divf %20, %21 : vector<16x1xf32>
    %23 = vector.broadcast %22 : vector<16x1xf32> to vector<16x128xf32>
    %24 = arith.subf %16, %23 : vector<16x128xf32>
    %25 = arith.mulf %24, %24 : vector<16x128xf32>
    %cst_18 = arith.constant dense<0.000000e+00> : vector<16xf32>
    %26 = vector.multi_reduction <add>, %25, %cst_18 [1] : vector<16x128xf32> to vector<16xf32>
    %27 = vector.shape_cast %26 : vector<16xf32> to vector<16x1xf32>
    %cst_19 = arith.constant 1.280000e+02 : f32
    %28 = vector.broadcast %cst_19 : f32 to vector<16x1xf32>
    %29 = arith.divf %27, %28 : vector<16x1xf32>
    %cst_20 = arith.constant 9.99999974E-6 : f32
    %30 = vector.broadcast %cst_20 : f32 to vector<16x1xf32>
    %31 = arith.addf %29, %30 : vector<16x1xf32>
    %32 = math.rsqrt %31 : vector<16x1xf32>
    %33 = vector.broadcast %32 : vector<16x1xf32> to vector<16x128xf32>
    %34 = arith.mulf %24, %33 : vector<16x128xf32>
    %35 = vector.broadcast %17 : vector<1x128xf32> to vector<16x128xf32>
    %36 = arith.mulf %34, %35 : vector<16x128xf32>
    %37 = vector.broadcast %18 : vector<1x128xf32> to vector<16x128xf32>
    %38 = arith.addf %36, %37 : vector<16x128xf32>
    %39 = arith.truncf %38 : vector<16x128xf32> to vector<16x128xbf16>
    %c0_21 = arith.constant 0 : index
    %c0_22 = arith.constant 0 : index
    %40 = vector.load %arg6[%c0_21, %c0_22] : memref<128x128xbf16, #tpu.memory_space<vmem>>, vector<128x128xbf16>
    %cst_23 = arith.constant dense<0.000000e+00> : vector<16x128xf32>
    %41 = tpu.matmul %39, %40, %cst_23 {dimension_numbers = #tpu.dot_dimension_numbers<[1], [0], [0], [1], [0, 0, 1, 1], [], []>} : vector<16x128xbf16>, vector<128x128xbf16>, vector<16x128xf32> -> vector<16x128xf32>
    %c0_24 = arith.constant 0 : index
    %c0_25 = arith.constant 0 : index
    %42 = vector.load %arg7[%c0_24, %c0_25] : memref<1x128xf32, #tpu.memory_space<vmem>>, vector<1x128xf32>
    %43 = vector.broadcast %42 : vector<1x128xf32> to vector<16x128xf32>
    %44 = arith.addf %41, %43 : vector<16x128xf32>
    %cst_26 = arith.constant 0.000000e+00 : f32
    %45 = vector.broadcast %cst_26 : f32 to vector<16x128xf32>
    %46 = arith.maximumf %44, %45 : vector<16x128xf32>
    %47 = arith.addf %38, %46 : vector<16x128xf32>
    %c0_27 = arith.constant 0 : index
    %c0_28 = arith.constant 0 : index
    %48 = vector.load %arg10[%c0_27, %c0_28] : memref<1x128xf32, #tpu.memory_space<vmem>>, vector<1x128xf32>
    %c0_29 = arith.constant 0 : index
    %c0_30 = arith.constant 0 : index
    %49 = vector.load %arg11[%c0_29, %c0_30] : memref<1x128xf32, #tpu.memory_space<vmem>>, vector<1x128xf32>
    %cst_31 = arith.constant dense<0.000000e+00> : vector<16xf32>
    %50 = vector.multi_reduction <add>, %47, %cst_31 [1] : vector<16x128xf32> to vector<16xf32>
    %51 = vector.shape_cast %50 : vector<16xf32> to vector<16x1xf32>
    %cst_32 = arith.constant 1.280000e+02 : f32
    %52 = vector.broadcast %cst_32 : f32 to vector<16x1xf32>
    %53 = arith.divf %51, %52 : vector<16x1xf32>
    %54 = vector.broadcast %53 : vector<16x1xf32> to vector<16x128xf32>
    %55 = arith.subf %47, %54 : vector<16x128xf32>
    %56 = arith.mulf %55, %55 : vector<16x128xf32>
    %cst_33 = arith.constant dense<0.000000e+00> : vector<16xf32>
    %57 = vector.multi_reduction <add>, %56, %cst_33 [1] : vector<16x128xf32> to vector<16xf32>
    %58 = vector.shape_cast %57 : vector<16xf32> to vector<16x1xf32>
    %cst_34 = arith.constant 1.280000e+02 : f32
    %59 = vector.broadcast %cst_34 : f32 to vector<16x1xf32>
    %60 = arith.divf %58, %59 : vector<16x1xf32>
    %cst_35 = arith.constant 9.99999974E-6 : f32
    %61 = vector.broadcast %cst_35 : f32 to vector<16x1xf32>
    %62 = arith.addf %60, %61 : vector<16x1xf32>
    %63 = math.rsqrt %62 : vector<16x1xf32>
    %64 = vector.broadcast %63 : vector<16x1xf32> to vector<16x128xf32>
    %65 = arith.mulf %55, %64 : vector<16x128xf32>
    %66 = vector.broadcast %48 : vector<1x128xf32> to vector<16x128xf32>
    %67 = arith.mulf %65, %66 : vector<16x128xf32>
    %68 = vector.broadcast %49 : vector<1x128xf32> to vector<16x128xf32>
    %69 = arith.addf %67, %68 : vector<16x128xf32>
    %70 = arith.truncf %69 : vector<16x128xf32> to vector<16x128xbf16>
    %c0_36 = arith.constant 0 : index
    %c0_37 = arith.constant 0 : index
    %71 = vector.load %arg12[%c0_36, %c0_37] : memref<16x128xbf16, #tpu.memory_space<vmem>>, vector<16x128xbf16>
    tpu.vector_store %arg12[%c0_36, %c0_37], %70 {strides = array<i32>} : memref<16x128xbf16, #tpu.memory_space<vmem>>, vector<16x128xbf16>,
    return
  }
  func.func @transform_0(%arg0: i32) -> (i32, i32) {
    %c0_i32 = arith.constant 0 : i32
    %c0_i32_0 = arith.constant 0 : i32
    return %arg0, %c0_i32 : i32, i32
  }
  func.func @transform_1(%arg0: i32) -> (i32, i32) {
    %c0_i32 = arith.constant 0 : i32
    %c0_i32_0 = arith.constant 0 : i32
    %c0_i32_1 = arith.constant 0 : i32
    return %c0_i32, %c0_i32_0 : i32, i32
  }
  func.func @transform_2(%arg0: i32) -> (i32, i32) {
    %c0_i32 = arith.constant 0 : i32
    %c0_i32_0 = arith.constant 0 : i32
    %c0_i32_1 = arith.constant 0 : i32
    return %c0_i32, %c0_i32_0 : i32, i32
  }
  func.func @transform_3(%arg0: i32) -> (i32, i32) {
    %c0_i32 = arith.constant 0 : i32
    %c0_i32_0 = arith.constant 0 : i32
    %c0_i32_1 = arith.constant 0 : i32
    return %c0_i32, %c0_i32_0 : i32, i32
  }
  func.func @transform_4(%arg0: i32) -> (i32, i32) {
    %c0_i32 = arith.constant 0 : i32
    %c0_i32_0 = arith.constant 0 : i32
    %c0_i32_1 = arith.constant 0 : i32
    return %c0_i32, %c0_i32_0 : i32, i32
  }
  func.func @transform_5(%arg0: i32) -> (i32, i32) {
    %c0_i32 = arith.constant 0 : i32
    %c0_i32_0 = arith.constant 0 : i32
    %c0_i32_1 = arith.constant 0 : i32
    return %c0_i32, %c0_i32_0 : i32, i32
  }
  func.func @transform_6(%arg0: i32) -> (i32, i32) {
    %c0_i32 = arith.constant 0 : i32
    %c0_i32_0 = arith.constant 0 : i32
    %c0_i32_1 = arith.constant 0 : i32
    return %c0_i32, %c0_i32_0 : i32, i32
  }
  func.func @transform_7(%arg0: i32) -> (i32, i32) {
    %c0_i32 = arith.constant 0 : i32
    %c0_i32_0 = arith.constant 0 : i32
    %c0_i32_1 = arith.constant 0 : i32
    return %c0_i32, %c0_i32_0 : i32, i32
  }
  func.func @transform_8(%arg0: i32) -> (i32, i32) {
    %c0_i32 = arith.constant 0 : i32
    %c0_i32_0 = arith.constant 0 : i32
    %c0_i32_1 = arith.constant 0 : i32
    return %c0_i32, %c0_i32_0 : i32, i32
  }
  func.func @transform_9(%arg0: i32) -> (i32, i32) {
    %c0_i32 = arith.constant 0 : i32
    %c0_i32_0 = arith.constant 0 : i32
    %c0_i32_1 = arith.constant 0 : i32
    return %c0_i32, %c0_i32_0 : i32, i32
  }
  func.func @transform_10(%arg0: i32) -> (i32, i32) {
    %c0_i32 = arith.constant 0 : i32
    %c0_i32_0 = arith.constant 0 : i32
    %c0_i32_1 = arith.constant 0 : i32
    return %c0_i32, %c0_i32_0 : i32, i32
  }
  func.func @transform_11(%arg0: i32) -> (i32, i32) {
    %c0_i32 = arith.constant 0 : i32
    %c0_i32_0 = arith.constant 0 : i32
    return %arg0, %c0_i32 : i32, i32
  }
}

</mosaic_0001>

<bundles_post_ra>
// kernel: neural_lm3_forward.3
= control target key start
LH: loop header
LB: loop body
LE: loop exit
PB: predicated region body
PF: predicated region fallthrough
CT: control target
= control target key end

     0   :  { %8 = vsyncpa [#allocation4], 0  ;;  %s978_s0 = inlined_call_operand.vmem [shape: bf16[16,128], index: 0, kind: input, shape index: {}]   ;;  %s979_s1 = inlined_call_operand.vmem [shape: bf16[128,512], index: 1, kind: input, shape index: {}]   ;;  %s980_s2 = inlined_call_operand.vmem [shape: f32[1,512], index: 2, kind: input, shape index: {}]   ;;  %s981_s3 = inlined_call_operand.hbm [shape: f32[16,512], index: 3, kind: output, shape index: {}]  }
   0x1   :  { %10 = vsyncpa [#allocation4 + $0x1], 0  ;;  %s830_s12 = smov 0   ;;  %s832_s13 = smov 0  }
   0x2   :  { %s834_s14 = smov 0   ;;  %s836_s15 = smov 0  }
   0x3   :  { %s838_s16 = smov 0   ;;  %s840_s17 = smov 0  }
   0x4 LB: > { %s607_s18 = sadd.s32 4294967295, %s803_s17   ;;  %s608_s19 = sadd.s32 4294967294, %s803_s17   ;;  %s803_s17 = sphi %s840_s17, %s16_s17   ;;  %s799_s16 = sphi %s838_s16, %s988_s16   ;;  %s795_s15 = sphi %s836_s15, %s987_s15   ;;  %s791_s14 = sphi %s834_s14, %s986_s14   ;;  %s787_s13 = sphi %s832_s13, %s985_s13   ;;  %s783_s12 = sphi %s830_s12, %s984_s12  }
   0x5   : > { %s28_s20 = sadd.s32 1, %s799_s16  ;;  %s61_s21 = sadd.s32 1, %s791_s14 }
   0x6   : > { %p30_p0 = scmp.ge.s32.totalorder %s28_s20, 2  ;;  %p68_p1 = scmp.ne.s32.totalorder %s791_s14, %s787_s13 }
   0x7   : > { %p69_p2 = scmp.eq.s32.totalorder %s803_s17, 0  ;;  %p126_p3 = scmp.eq.s32.totalorder %s607_s18, 1 }
   0x8   : > { %s990_s20 = smov (%p30_p0, %s28_s20), 0  ;;  %p131_p6 = scmp.ne.s32.totalorder %s787_s13, %s783_s12 }
   0x9   : > { %p70_p4 = por %p69_p2, %p68_p1  ;;  %p869_p5 = por %p126_p3, %p68_p1 }
   0xa   : > { %s58_s23 = ssub.s32 %s799_s16, %s990_s20  ;;  %p132_p8 = scmp.eq.s32.totalorder %s608_s19, 1 }
   0xb   : > { %p59_p7 = scmp.eq.s32.totalorder %s58_s23, 0  ;;  %p611_p10 = scmp.ge.s32.totalorder %s803_s17, 2 }
   0xc   : > { %p880_p9 = por %p132_p8, %p131_p6 }
   0xd   : > { %s878_s24 = scalar_select %p59_p7, %s791_s14, %s61_s21  }
   0xe   : > { %157 = sbr.rel (%p611_p10) target bundleno = 31 (0x1f), region = 20 }
  0x13   : > { %160 = sbr.rel (!%p70_p4) target bundleno = 31 (0x1f), region = 24  ;;  %s162_s26 = sand.u32 (%p70_p4), 1, %s791_s14  }
  0x14   : > { %s641_s27 = sshll.u32 (%p70_p4), %s799_s16, 3  ;;  %s612_s28 = sshll.u32 (%p70_p4), %s162_s26, 7 }
  0x15   : > { %s892_s4 = scalar_lea.vmem (%p70_p4), %s979_s1, %s641_s27  ;;  %s164_s5 = scalar_lea.vmem (%p70_p4), [#allocation2], %s612_s28 }
  0x16   : > { %v226_v0 = vld [vmem:[%s892_s4] sm:$0xff] (%p70_p4)  ;;  %v228_v1 = vld [vmem:[%s892_s4 + $0x10] sm:$0xff] (%p70_p4) }
  0x17   : > { %v230_v2 = vld [vmem:[%s892_s4 + $0x20] sm:$0xff] (%p70_p4)  ;;  %227 = vst [vmem:[%s164_s5] sm:$0xff] (%p70_p4), %v226_v0  ;;  %229 = vst [vmem:[%s164_s5 + $0x8] sm:$0xff] (%p70_p4), %v228_v1  ;;  %v232_v3 = vld [vmem:[%s892_s4 + $0x30] sm:$0xff] (%p70_p4) }
  0x18   : > { %231 = vst [vmem:[%s164_s5 + $0x10] sm:$0xff] %v230_v2  ;;  %v234_v4 = vld [vmem:[%s892_s4 + $0x40] sm:$0xff]  ;;  %v236_v5 = vld [vmem:[%s892_s4 + $0x50] sm:$0xff]  ;;  %233 = vst [vmem:[%s164_s5 + $0x18] sm:$0xff] %v232_v3 }
  0x19   : > { %235 = vst [vmem:[%s164_s5 + $0x20] sm:$0xff] %v234_v4  ;;  %237 = vst [vmem:[%s164_s5 + $0x28] sm:$0xff] %v236_v5  ;;  %v238_v6 = vld [vmem:[%s892_s4 + $0x60] sm:$0xff]  ;;  %v240_v7 = vld [vmem:[%s892_s4 + $0x70] sm:$0xff] }
  0x1a   : > { %v242_v8 = vld [vmem:[%s892_s4 + $0x80] sm:$0xff]  ;;  %239 = vst [vmem:[%s164_s5 + $0x30] sm:$0xff] %v238_v6  ;;  %241 = vst [vmem:[%s164_s5 + $0x38] sm:$0xff] %v240_v7  ;;  %v244_v9 = vld [vmem:[%s892_s4 + $0x90] sm:$0xff] }
  0x1b   : > { %243 = vst [vmem:[%s164_s5 + $0x40] sm:$0xff] %v242_v8  ;;  %v246_v10 = vld [vmem:[%s892_s4 + $0xa0] sm:$0xff]  ;;  %v248_v11 = vld [vmem:[%s892_s4 + $0xb0] sm:$0xff]  ;;  %245 = vst [vmem:[%s164_s5 + $0x48] sm:$0xff] %v244_v9 }
  0x1c   : > { %247 = vst [vmem:[%s164_s5 + $0x50] sm:$0xff] %v246_v10  ;;  %249 = vst [vmem:[%s164_s5 + $0x58] sm:$0xff] %v248_v11  ;;  %v250_v12 = vld [vmem:[%s892_s4 + $0xc0] sm:$0xff]  ;;  %v252_v13 = vld [vmem:[%s892_s4 + $0xd0] sm:$0xff] }
  0x1d   : > { %v254_v14 = vld [vmem:[%s892_s4 + $0xe0] sm:$0xff]  ;;  %251 = vst [vmem:[%s164_s5 + $0x60] sm:$0xff] %v250_v12  ;;  %253 = vst [vmem:[%s164_s5 + $0x68] sm:$0xff] %v252_v13  ;;  %v256_v15 = vld [vmem:[%s892_s4 + $0xf0] sm:$0xff] }
  0x1e   : > { %255 = vst [vmem:[%s164_s5 + $0x70] sm:$0xff] %v254_v14  ;;  %257 = vst [vmem:[%s164_s5 + $0x78] sm:$0xff] %v256_v15 }
  0x1f PF: > { %p615_p11 = scmp.ge.s32.totalorder %s803_s17, 1  ;;  %p270_p12 = scmp.lt.s32.totalorder %s803_s17, 3 }
  0x21   : > { %p271_p13 = pnand %p615_p11, %p270_p12 }
  0x22   : > { %s913_s6 = sand.u32 (!%p271_p13), 1, %s787_s13   ;;  %s618_s11 = sshll.u32 (!%p271_p13), %s795_s15, 1 }
  0x23   : > { %274 = sbr.rel (%p271_p13) target bundleno = 289 (0x121), region = 66  ;;  %s616_s7 = sshll.u32 (!%p271_p13), %s913_s6, 7 }
  0x24   : > { %s279_s8 = scalar_lea.vmem (!%p271_p13), [#allocation2], %s616_s7  ;;  %p317_p0 = scmp.lt.s32.totalorder (!%p271_p13), %s618_s11, 3 }
  0x25   : > { %s617_s23 = sshll.u32 (!%p271_p13), %s913_s6, 5  ;;  %s642_s28 = sshll.u32 (!%p271_p13), %s795_s15, 8 }
  0x26   : > { %s308_s26 = scalar_lea.vmem (!%p271_p13), [#allocation3], %s617_s23  ;;  %s930_s4 = scalar_lea.hbm (!%p271_p13), %s981_s3, %s642_s28 }
  0x27   : > { %s504_s27 = sshll.u32 (!%p271_p13), %s308_s26, 4  ;;  %s488_s5 = scalar_lea.sflag (!%p271_p13), [#allocation4], %s913_s6  ;;  %s925_s27 = int_to_ptr.vmem [resolvable:$true] %s504_s27 }
  0x28   : > { %v805_v16 = vmov 0   ;;  %v702_v17 = vld [vmem:[%s279_s8 + $0x74] ss:$8 sps:$4 sm:$0xff]   ;;  %v704_v18 = vld [vmem:[%s279_s8 + $0x70] ss:$8 sps:$4 sm:$0xff]   ;;  %v726_v33 = vld [vmem:[%s978_s0] sm:$0xff]   ;;  %v344_v34 = vlaneseq }
  0x29   : > { %472 = vmatprep.mubr.bf16.mxu0 %v805_v16  ;;  %440 = vmatprep.subr.bf16.mxu0 %v702_v17  ;;  %v705_v19 = vld [vmem:[%s279_s8 + $0x64] ss:$8 sps:$4 sm:$0xff]   ;;  %v707_v20 = vld [vmem:[%s279_s8 + $0x60] ss:$8 sps:$4 sm:$0xff]   ;;  %v708_v21 = vld [vmem:[%s279_s8 + $0x54] ss:$8 sps:$4 sm:$0xff]  }
  0x2a   : > { %441 = vmatpush1.bf16.msra.mxu0 %v704_v18  ;;  %v710_v22 = vld [vmem:[%s279_s8 + $0x50] ss:$8 sps:$4 sm:$0xff]   ;;  %v711_v23 = vld [vmem:[%s279_s8 + $0x44] ss:$8 sps:$4 sm:$0xff]   ;;  %v713_v24 = vld [vmem:[%s279_s8 + $0x40] ss:$8 sps:$4 sm:$0xff]  }
  0x2b   : > { %442 = vmatprep.subr.bf16.mxu0 %v705_v19  ;;  %v714_v25 = vld [vmem:[%s279_s8 + $0x34] ss:$8 sps:$4 sm:$0xff]   ;;  %v716_v26 = vld [vmem:[%s279_s8 + $0x30] ss:$8 sps:$4 sm:$0xff]   ;;  %v717_v27 = vld [vmem:[%s279_s8 + $0x24] ss:$8 sps:$4 sm:$0xff]  }
  0x2c   : > { %v719_v28 = vld [vmem:[%s279_s8 + $0x20] ss:$8 sps:$4 sm:$0xff]   ;;  %v720_v29 = vld [vmem:[%s279_s8 + $0x14] ss:$8 sps:$4 sm:$0xff]   ;;  %v722_v30 = vld [vmem:[%s279_s8 + $0x10] ss:$8 sps:$4 sm:$0xff]  }
  0x2d   : > { %v723_v31 = vld [vmem:[%s279_s8 + $0x4] ss:$8 sps:$4 sm:$0xff]   ;;  %v725_v32 = vld [vmem:[%s279_s8] ss:$8 sps:$4 sm:$0xff]   ;;  %s992_s11 = smov (!%p317_p0, %s618_s11), 3  ;;  %v345_v35 = vshrl.u32 %v344_v34, 7 }
  0x2e   : > { %443 = vmatpush1.bf16.msra.mxu0 %v707_v20  ;;  %s319_s21 = scalar_lea.vmem %s980_s2, %s992_s11  ;;  %s727_s7 = scalar_lea.vmem %s925_s27, 512 }
  0x2f   : > { %444 = vmatprep.subr.bf16.mxu0 %v708_v21  ;;  %v346_v36 = vsub.s32 0, %v345_v35  ;;  %v342_v37 = vld [vmem:[%s319_s21] sm:$0x3]  ;;  %v350_v38 = vsub.s32 1, %v345_v35  ;;  %p728_p1 = scmp.ne.s32.totalorder %s925_s27, %s727_s7  ;;  %s806_s15 = smov [#allocation3]  }
  0x30   : > { %s731_s8 = sshll.u32 %s806_s15, 4  ;;  %s732_s8 = int_to_ptr.vmem [resolvable:$false] %s731_s8 }
  0x31   : > { %v347_v39 = vrot.slane %v342_v37, %v346_v36  ;;  %v351_v40 = vrot.slane %v342_v37, %v350_v38  ;;  %p729_p2 = pnand %p728_p1, %p869_p5  ;;  %s733_s9 = scalar_lea.vmem %s732_s8, 1024 }
  0x32   : > { %445 = vmatpush1.bf16.msra.mxu0 %v710_v22  ;;  %p734_p4 = scmp.lt.s32.totalorder %s925_s27, %s732_s8  ;;  %p735_p6 = scmp.lt.s32.totalorder %s733_s9, %s727_s7 }
  0x33   : > { %446 = vmatprep.subr.bf16.mxu0 %v711_v23  ;;  %p730_p3 = pneg %p729_p2 }
  0x34   : > { %p736_p7 = por %p735_p6, %p734_p4 }
  0x36   : > { %447 = vmatpush1.bf16.msra.mxu0 %v713_v24  ;;  %p737_p8 = pnand %p736_p7, %p730_p3 }
  0x37   : > { %448 = vmatprep.subr.bf16.mxu0 %v714_v25 }
  0x3a   : > { %449 = vmatpush1.bf16.msra.mxu0 %v716_v26 }
  0x3b   : > { %450 = vmatprep.subr.bf16.mxu0 %v717_v27 }
  0x3e   : > { %451 = vmatpush1.bf16.msra.mxu0 %v719_v28 }
  0x3f   : > { %452 = vmatprep.subr.bf16.mxu0 %v720_v29 }
  0x42   : > { %453 = vmatpush1.bf16.msra.mxu0 %v722_v30 }
  0x43   : > { %454 = vmatprep.subr.bf16.mxu0 %v723_v31 }
  0x46   : > { %455 = vmatpush1.bf16.msra.mxu0 %v725_v32 }
  0x49   : > { %473 = vmatmul.mubr.bf16.vlgmr.msra.gmra.mxu0 %v726_v33 }
 0x109   : > { %v474_v41 = vpop.f32.mrf.mxu0 }
 0x10a   : > { %v475_v42 = vadd.f32 %v474_v41, %v347_v39 }
 0x10b   : > { %v476_v43 = vpop.f32.mrf.mxu0 }
 0x10c   : > { %483 = vst [vmem:[%s308_s26] sm:$0xff] %v475_v42  ;;  %v477_v44 = vadd.f32 %v476_v43, %v351_v40 }
 0x10d   : > { %v478_v45 = vpop.f32.mrf.mxu0 }
 0x10e   : > { %484 = vst [vmem:[%s308_s26 + $0x8] sm:$0xff] %v477_v44  ;;  %v479_v46 = vadd.f32 %v478_v45, %v347_v39 }
 0x10f   : > { %v480_v47 = vpop.f32.mrf.mxu0 }
 0x110   : > { %485 = vst [vmem:[%s308_s26 + $0x10] sm:$0xff] %v479_v46  ;;  %v481_v48 = vadd.f32 %v480_v47, %v351_v40 }
 0x112   : > { %486 = vst [vmem:[%s308_s26 + $0x18] sm:$0xff] %v481_v48 }
 0x113   : > { %740 = shalt.err (!%p737_p8)
}
 0x114   : > { %s741_s10 = scalar_lea.hbm %s930_s4, 512  ;;  %s745_s19 = scalar_lea.hbm %s981_s3, 1024 }
 0x115   : > { %p742_p11 = scmp.ne.s32.totalorder %s930_s4, %s741_s10  ;;  %p746_p0 = scmp.lt.s32.totalorder %s930_s4, %s981_s3 }
 0x116   : > { %p747_p1 = scmp.lt.s32.totalorder %s745_s19, %s741_s10 }
 0x117   : > { %p743_p12 = pnand %p742_p11, %p869_p5 }
 0x118   : > { %p748_p2 = por %p747_p1, %p746_p0 }
 0x119   : > { %p744_p13 = pneg %p743_p12 }
 0x11b   : > { %p749_p3 = pnand %p748_p2, %p744_p13 }
 0x11d   : > { %752 = shalt.err (!%p749_p3)
}
 0x11e   : > { %s807_s26 = smov 256   ;;  %s808_s28 = smov 512  }
 0x11f   : > { %s809_s29 = smov 16  }
 0x120   : > { %643 = dma.vmem_to_hbm [thread:$0]  (%p869_p5), %s925_s27, 512, %s930_s4, %s488_s5, %s807_s26, %s808_s28, %s809_s29  }
 0x121 PF: > { %s519_s30 = sand.u32 1, %s783_s12   ;;  %p646_p4 = pnand %p611_p10, %p880_p9 }
 0x122   : > { %s520_s7 = scalar_lea.sflag [#allocation4], %s519_s30 }
 0x123   : > { %p647_p6 = pneg %p646_p4 }
 0x125   : > { %778 = dma.done.wait (%p647_p6), %s520_s7, 512  }
 0x126   : > { %780 = vsyncadd (%p647_p6), %s520_s7, 4294966784  ;;  %s16_s17 = sadd.s32 1, %s803_s17   ;;  %s984_s12 = smov %s787_s13 }
 0x127   : > { %p13_p7 = scmp.ge.s32.totalorder %s16_s17, 4   ;;  %s985_s13 = smov %s791_s14 }
 0x128   : > { %s986_s14 = smov %s878_s24  ;;  %s987_s15 = smov %s799_s16 }
 0x129   : > { %s988_s16 = smov %s990_s20  ;;  %15 = sbr.rel (!%p13_p7) target bundleno = 4 (0x4), region = 116 }
 0x12e   :  { %525 = vsyncpa [#allocation4], 1 }
 0x12f   :  { %527 = vsyncpa [#allocation4 + $0x1], 1 }

// kernel: neural_lm3_forward.2
= control target key start
LH: loop header
LB: loop body
LE: loop exit
PB: predicated region body
PF: predicated region fallthrough
CT: control target
= control target key end

     0   :  { %v631_v0 = vmov 0.0   ;;  %vm632_vm0 = vmmov 0   ;;  %vm101_vm1 = vcmask 785408   ;;  %s814_s1 = inlined_call_operand.vmem [shape: bf16[96,128], index: 1, kind: input, shape index: {}]   ;;  %s815_s3 = inlined_call_operand.vmem [shape: bf16[128,128], index: 3, kind: input, shape index: {}]   ;;  %s816_s0 = inlined_call_operand.vmem [shape: bf16[16,96], index: 0, kind: input, shape index: {}]   ;;  %s817_s2 = inlined_call_operand.vmem [shape: f32[1,128], index: 2, kind: input, shape index: {}]   ;;  %s818_s4 = inlined_call_operand.vmem [shape: f32[1,128], index: 4, kind: input, shape index: {}]   ;;  %s819_s5 = inlined_call_operand.vmem [shape: bf16[128,128], index: 5, kind: input, shape index: {}]   ;;  %s820_s7 = inlined_call_operand.vmem [shape: f32[1,128], index: 7, kind: input, shape index: {}]   ;;  %s821_s8 = inlined_call_operand.vmem [shape: f32[1,128], index: 8, kind: input, shape index: {}]   ;;  %s822_s6 = inlined_call_operand.vmem [shape: f32[1,128], index: 6, kind: input, shape index: {}]   ;;  %s823_s9 = inlined_call_operand.vmem [shape: f32[1,128], index: 9, kind: input, shape index: {}]   ;;  %s824_s10 = inlined_call_operand.vmem [shape: f32[1,128], index: 10, kind: input, shape index: {}]   ;;  %s825_s11 = inlined_call_operand.vmem [shape: bf16[16,128], index: 11, kind: output, shape index: {}]  }
   0x1   :  { %542 = vmatprep.subr.bf16.mxu0 %v631_v0  ;;  %v600_v1 = vld [vmem:[%s814_s1 + $0x28] sm:$0xff]   ;;  %554 = vmatprep.mubr.msk.bf16.mxu0 %vm632_vm0, %v631_v0  ;;  %v601_v2 = vld [vmem:[%s814_s1 + $0x20] sm:$0xff]   ;;  %v602_v3 = vld [vmem:[%s814_s1 + $0x18] sm:$0xff]  }
   0x2   :  { %558 = vmatprep.subr.bf16.mxu1 %v631_v0  ;;  %574 = vmatprep.mubr.msk.bf16.mxu1 %vm632_vm0, %v631_v0  ;;  %v607_v4 = vld [vmem:[%s815_s3 + $0x38] sm:$0xff]   ;;  %v608_v5 = vld [vmem:[%s815_s3 + $0x30] sm:$0xff]   ;;  %v609_v7 = vld [vmem:[%s815_s3 + $0x28] sm:$0xff]  }
   0x3   :  { %543 = vmatpush3.bf16.msra.mxu0 %v600_v1  ;;  %559 = vmatpush3.bf16.msra.mxu1 %v607_v4  ;;  %v603_v6 = vld [vmem:[%s814_s1 + $0x10] sm:$0xff]   ;;  %v604_v8 = vld [vmem:[%s814_s1 + $0x8] sm:$0xff]   ;;  %v610_v9 = vld [vmem:[%s815_s3 + $0x20] sm:$0xff]  }
   0x4   :  { %544 = vmatprep.subr.bf16.mxu0 %v631_v0  ;;  %560 = vmatprep.subr.bf16.mxu1 %v631_v0  ;;  %v605_v10 = vld [vmem:[%s814_s1] sm:$0xff]   ;;  %v611_v12 = vld [vmem:[%s815_s3 + $0x18] sm:$0xff]   ;;  %v612_v13 = vld [vmem:[%s815_s3 + $0x10] sm:$0xff]  }
   0x5   :  { %v606_v11 = vld [vmem:[%s816_s0] sm:$0xff]   ;;  %v613_v14 = vld [vmem:[%s815_s3 + $0x8] sm:$0xff]   ;;  %v615_v37 = vld [vmem:[%s819_s5 + $0x38] sm:$0xff]  }
   0x6   :  { %v614_v15 = vld [vmem:[%s815_s3] sm:$0xff]   ;;  %v616_v46 = vld [vmem:[%s819_s5 + $0x30] sm:$0xff]   ;;  %v617_v47 = vld [vmem:[%s819_s5 + $0x28] sm:$0xff]  }
   0x7   :  { %545 = vmatpush3.bf16.msra.mxu0 %v601_v2  ;;  %561 = vmatpush3.bf16.msra.mxu1 %v608_v5  ;;  %v477_v16 = vld [vmem:[%s817_s2] ss:$0 sm:$0xff]  ;;  %v619_v49 = vld [vmem:[%s819_s5 + $0x18] sm:$0xff]   ;;  %v620_v50 = vld [vmem:[%s819_s5 + $0x10] sm:$0xff]  }
   0x8   :  { %546 = vmatprep.subr.bf16.mxu0 %v631_v0  ;;  %562 = vmatprep.subr.bf16.mxu1 %v631_v0  ;;  %v486_v26 = vld [vmem:[%s818_s4] ss:$0 sm:$0xff]  ;;  %v621_v51 = vld [vmem:[%s819_s5 + $0x8] sm:$0xff]  }
   0x9   :  { %v618_v48 = vld [vmem:[%s819_s5 + $0x20] sm:$0xff]  }
   0xa   :  { %v622_v52 = vld [vmem:[%s819_s5] sm:$0xff]  }
   0xb   :  { %547 = vmatpush3.bf16.msra.mxu0 %v602_v3  ;;  %563 = vmatpush3.bf16.msra.mxu1 %v609_v7  ;;  %v495_v61 = vld [vmem:[%s820_s7] ss:$0 sm:$0xff] }
   0xc   :  { %548 = vmatprep.subr.bf16.mxu0 %v631_v0  ;;  %564 = vmatprep.subr.bf16.mxu1 %v631_v0 }
   0xf   :  { %549 = vmatpush3.bf16.msra.mxu0 %v603_v6  ;;  %565 = vmatpush3.bf16.msra.mxu1 %v610_v9  ;;  %v497_v6 = vld [vmem:[%s822_s6] ss:$0 sm:$0xff] }
  0x10   :  { %550 = vmatprep.subr.bf16.mxu0 %v631_v0  ;;  %566 = vmatprep.subr.bf16.mxu1 %v631_v0 }
  0x13   :  { %551 = vmatpush3.bf16.msra.mxu0 %v604_v8  ;;  %567 = vmatpush3.bf16.msra.mxu1 %v611_v12 }
  0x14   :  { %552 = vmatprep.subr.bf16.mxu0 %v631_v0  ;;  %568 = vmatprep.subr.bf16.mxu1 %v631_v0 }
  0x17   :  { %553 = vmatpush3.bf16.msra.mxu0 %v605_v10  ;;  %569 = vmatpush3.bf16.msra.mxu1 %v612_v13 }
  0x18   :  { %578 = vmatprep.subr.bf16.mxu0 %v631_v0  ;;  %570 = vmatprep.subr.bf16.mxu1 %v631_v0 }
  0x1a   :  { %555 = vmatmul.mubr.msk.bf16.vlgmr.msra.gmra.mxu0 %vm101_vm1, %v606_v11 }
  0x1b   :  { %594 = vmatprep.mubr.msk.bf16.mxu0 %vm632_vm0, %v631_v0  ;;  %571 = vmatpush3.bf16.msra.mxu1 %v613_v14 }
  0x1c   :  { %572 = vmatprep.subr.bf16.mxu1 %v631_v0  ;;  %579 = vmatpush3.bf16.msra.mxu0 %v615_v37  ;;  %v507_v37 = vld [vmem:[%s824_s10] ss:$0 sm:$0xff] }
  0x1d   :  { %580 = vmatprep.subr.bf16.mxu0 %v631_v0 }
  0x1f   :  { %573 = vmatpush3.bf16.msra.mxu1 %v614_v15 }
  0x20   :  { %581 = vmatpush3.bf16.msra.mxu0 %v616_v46 }
  0x21   :  { %582 = vmatprep.subr.bf16.mxu0 %v631_v0 }
  0x24   :  { %583 = vmatpush3.bf16.msra.mxu0 %v617_v47 }
  0x25   :  { %584 = vmatprep.subr.bf16.mxu0 %v631_v0 }
  0x28   :  { %585 = vmatpush3.bf16.msra.mxu0 %v618_v48 }
  0x29   :  { %586 = vmatprep.subr.bf16.mxu0 %v631_v0 }
  0x2c   :  { %587 = vmatpush3.bf16.msra.mxu0 %v619_v49 }
  0x2d   :  { %588 = vmatprep.subr.bf16.mxu0 %v631_v0 }
  0x30   :  { %589 = vmatpush3.bf16.msra.mxu0 %v620_v50 }
  0x31   :  { %590 = vmatprep.subr.bf16.mxu0 %v631_v0 }
  0x34   :  { %591 = vmatpush3.bf16.msra.mxu0 %v621_v51 }
  0x35   :  { %592 = vmatprep.subr.bf16.mxu0 %v631_v0  ;;  %v496_v0 = vld [vmem:[%s821_s8] ss:$0 sm:$0xff] }
  0x38   :  { %593 = vmatpush3.bf16.msra.mxu0 %v622_v52 }
  0xda   :  { %v139_v17 = vpop.f32.mrf.mxu0 }
  0xdb   :  { %v140_v19 = vadd.f32 %v477_v16, %v139_v17 }
  0xdc   :  { %v556_v18 = vpop.f32.mrf.mxu0 }
  0xdd   :  { %v146_v23 = vmax.f32 %v140_v19, 0.0 }
  0xde   :  { %v142_v20 = vpop.f32.mrf.mxu0 }
  0xdf   :  { %v143_v21 = vadd.f32 %v477_v16, %v142_v20 }
  0xe0   :  { %v557_v22 = vpop.f32.mrf.mxu0 }
  0xe1   :  { %v147_v24 = vmax.f32 %v143_v21, 0.0 }
  0xe3   :  { %v148_v25 = vpack.c.bf16 %v147_v24, %v146_v23 }
  0xe5   :  { %575 = vmatmul.mubr.bf16.vlgmr.msra.gmra.mxu1 %v148_v25 }
 0x1a5   :  { %v254_v27 = vpop.f32.mrf.mxu1 }
 0x1a6   :  { %v255_v28 = vadd.f32 %v486_v26, %v254_v27 }
 0x1a7   :  { %v576_v29 = vpop.f32.mrf.mxu1 }
 0x1a8   :  { %v261_v30 = vmax.f32 %v255_v28, 0.0 }
 0x1a9   :  { %v257_v31 = vpop.f32.mrf.mxu1 }
 0x1aa   :  { %v258_v32 = vadd.f32 %v486_v26, %v257_v31  ;;  %v263_v33 = vadd.f32 %v261_v30, %v146_v23 }
 0x1ab   :  { %v577_v34 = vpop.f32.mrf.mxu1 }
 0x1ac   :  { %v262_v35 = vmax.f32 %v258_v32, 0.0  ;;  %267 = vadd.xlane.f32.xlu0 %v263_v33 }
 0x1ae   :  { %v264_v36 = vadd.f32 %v262_v35, %v147_v24 }
 0x1b0   :  { %269 = vadd.xlane.f32.xlu0 %v264_v36 }
 0x235   :  { %v268_v38 = vpop.xlane.xlu0 %267 }
 0x236   :  { %v272_v39 = vmul.f32 0.0078125, %v268_v38 }
 0x238   :  { %v274_v40 = vsub.f32 %v263_v33, %v272_v39  ;;  %v506_v33 = vld [vmem:[%s823_s9] ss:$0 sm:$0xff] }
 0x239   :  { %v270_v41 = vpop.xlane.xlu0 %269 }
 0x23a   :  { %v273_v42 = vmul.f32 0.0078125, %v270_v41  ;;  %v276_v43 = vmul.f32 %v274_v40, %v274_v40 }
 0x23c   :  { %v275_v44 = vsub.f32 %v264_v36, %v273_v42  ;;  %278 = vadd.xlane.f32.xlu1 %v276_v43 }
 0x23e   :  { %v277_v45 = vmul.f32 %v275_v44, %v275_v44 }
 0x240   :  { %280 = vadd.xlane.f32.xlu1 %v277_v45 }
 0x2c5   :  { %v279_v53 = vpop.xlane.xlu1 %278 }
 0x2c6   :  { %v282_v54 = vmul.f32 0.0078125, %v279_v53 }
 0x2c8   :  { %v284_v55 = vadd.f32 1e-05, %v282_v54 }
 0x2c9   :  { %v281_v56 = vpop.xlane.xlu1 %280 }
 0x2ca   :  { %623 = vrsqrt.f32 %v284_v55  ;;  %v283_v57 = vmul.f32 0.0078125, %v281_v56 }
 0x2cc   :  { %v285_v58 = vadd.f32 1e-05, %v283_v57 }
 0x2ce   :  { %625 = vrsqrt.f32 %v285_v58 }
 0x2d7   :  { %v624_v59 = vpop.eup %623 }
 0x2d8   :  { %v288_v60 = vmul.f32 %v624_v59, %v274_v40 }
 0x2da   :  { %v296_v1 = vmul.f32 %v495_v61, %v288_v60 }
 0x2db   :  { %v626_v62 = vpop.eup %625 }
 0x2dc   :  { %v289_v63 = vmul.f32 %v626_v62, %v275_v44  ;;  %v304_v3 = vadd.f32 %v496_v0, %v296_v1 }
 0x2de   :  { %v297_v2 = vmul.f32 %v495_v61, %v289_v63 }
 0x2e0   :  { %v305_v4 = vadd.f32 %v496_v0, %v297_v2 }
 0x2e2   :  { %v306_v5 = vpack.c.bf16 %v305_v4, %v304_v3 }
 0x2e4   :  { %595 = vmatmul.mubr.bf16.vlgmr.msra.gmra.mxu0 %v306_v5 }
 0x3a4   :  { %v412_v7 = vpop.f32.mrf.mxu0 }
 0x3a5   :  { %v413_v8 = vadd.f32 %v497_v6, %v412_v7 }
 0x3a6   :  { %v596_v9 = vpop.f32.mrf.mxu0 }
 0x3a7   :  { %v419_v10 = vmax.f32 %v413_v8, 0.0 }
 0x3a8   :  { %v415_v11 = vpop.f32.mrf.mxu0 }
 0x3a9   :  { %v416_v12 = vadd.f32 %v497_v6, %v415_v11  ;;  %v421_v13 = vadd.f32 %v419_v10, %v304_v3 }
 0x3aa   :  { %v597_v14 = vpop.f32.mrf.mxu0 }
 0x3ab   :  { %v420_v15 = vmax.f32 %v416_v12, 0.0  ;;  %425 = vadd.xlane.f32.xlu0 %v421_v13 }
 0x3ad   :  { %v422_v16 = vadd.f32 %v420_v15, %v305_v4 }
 0x3af   :  { %427 = vadd.xlane.f32.xlu1 %v422_v16 }
 0x434   :  { %v426_v17 = vpop.xlane.xlu0 %425 }
 0x435   :  { %v429_v18 = vmul.f32 0.0078125, %v426_v17 }
 0x437   :  { %v431_v19 = vsub.f32 %v421_v13, %v429_v18 }
 0x438   :  { %v428_v20 = vpop.xlane.xlu1 %427 }
 0x439   :  { %v430_v21 = vmul.f32 0.0078125, %v428_v20  ;;  %v433_v22 = vmul.f32 %v431_v19, %v431_v19 }
 0x43b   :  { %v432_v23 = vsub.f32 %v422_v16, %v430_v21  ;;  %435 = vadd.xlane.f32.xlu0 %v433_v22 }
 0x43d   :  { %v434_v24 = vmul.f32 %v432_v23, %v432_v23 }
 0x43f   :  { %437 = vadd.xlane.f32.xlu1 %v434_v24 }
 0x4c4   :  { %v436_v25 = vpop.xlane.xlu0 %435 }
 0x4c5   :  { %v439_v26 = vmul.f32 0.0078125, %v436_v25 }
 0x4c7   :  { %v441_v27 = vadd.f32 1e-05, %v439_v26 }
 0x4c8   :  { %v438_v28 = vpop.xlane.xlu1 %437 }
 0x4c9   :  { %627 = vrsqrt.f32 %v441_v27  ;;  %v440_v29 = vmul.f32 0.0078125, %v438_v28 }
 0x4cb   :  { %v442_v30 = vadd.f32 1e-05, %v440_v29 }
 0x4cd   :  { %629 = vrsqrt.f32 %v442_v30 }
 0x4d6   :  { %v628_v31 = vpop.eup %627 }
 0x4d7   :  { %v445_v32 = vmul.f32 %v628_v31, %v431_v19 }
 0x4d9   :  { %v453_v35 = vmul.f32 %v506_v33, %v445_v32 }
 0x4da   :  { %v630_v34 = vpop.eup %629 }
 0x4db   :  { %v446_v36 = vmul.f32 %v630_v34, %v432_v23  ;;  %v461_v39 = vadd.f32 %v507_v37, %v453_v35 }
 0x4dd   :  { %v454_v38 = vmul.f32 %v506_v33, %v446_v36 }
 0x4df   :  { %v462_v40 = vadd.f32 %v507_v37, %v454_v38 }
 0x4e1   :  { %v515_v41 = vpack.c.bf16 %v462_v40, %v461_v39 }
 0x4e3   :  { %516 = vst [vmem:[%s825_s11] sm:$0xff] %v515_v41  }

</bundles_post_ra>
